<compile_context>
chip_gen: v5e
topology: v5e:2x2
jax: 0.10.0
libtpu: 0.0.40
codegen_flags: <defaults>
</compile_context>

<pallas_src>
import jax
import jax.numpy as jnp
from jax.experimental import pallas as pl
from jax.experimental.pallas import tpu as pltpu


def relunn_kernel(x_ref, w1_ref, b1_ref, w2_ref, b2_ref, w3_ref, b3_ref, o_ref):
    # One (TILE_B, in_dim) slab of the batch; weights/biases are resident full arrays.
    x = x_ref[...]
    h1 = jnp.dot(x, w1_ref[...], preferred_element_type=jnp.float32) + b1_ref[...]
    h1 = jnp.maximum(h1, 0.0)
    h2 = jnp.dot(h1, w2_ref[...], preferred_element_type=jnp.float32) + b2_ref[...]
    h2 = jnp.maximum(h2, 0.0)
    h3 = jnp.dot(h2, w3_ref[...], preferred_element_type=jnp.float32) + b3_ref[...]
    o_ref[...] = (7.0 * jnp.tanh(h3)).astype(o_ref.dtype)


def _round_up(n, m):
    return -(-n // m) * m


def relunn_forward(x, params, *, tile_b=1024):
    """x: (B, in_dim) float32.  params: dict of w1,b1,w2,b2,w3,b3."""
    w1, b1, w2, b2, w3, b3 = (params[k] for k in ("w1", "b1", "w2", "b2", "w3", "b3"))
    B, in_dim = x.shape
    neurons = w1.shape[1]
    out_dim = w3.shape[1]

    # --- lane-dense output: zero-pad the last layer to a multiple of 128 columns -------------
    out_pad = _round_up(out_dim, 128)
    w3p = jnp.zeros((neurons, out_pad), jnp.float32).at[:, :out_dim].set(w3)
    b3p = jnp.zeros((1, out_pad), jnp.float32).at[:, :out_dim].set(b3)

    # --- batch tiling: stream TILE_B rows per grid step (pad batch to a tile multiple) -------
    tb = min(tile_b, _round_up(B, 8))            # small batches: one tile, sublane-aligned
    b_pad = _round_up(B, tb)
    x_pad = x if b_pad == B else jnp.pad(x, ((0, b_pad - B), (0, 0)))
    grid = (b_pad // tb,)

    out = pl.pallas_call(
        relunn_kernel,
        out_shape=jax.ShapeDtypeStruct((b_pad, out_pad), jnp.float32),
        grid=grid,
        in_specs=[
            pl.BlockSpec((tb, in_dim), lambda i: (i, 0)),          # x: streamed over batch
            pl.BlockSpec((in_dim, neurons), lambda i: (0, 0)),     # w1: resident
            pl.BlockSpec((1, neurons), lambda i: (0, 0)),          # b1: resident
            pl.BlockSpec((neurons, neurons), lambda i: (0, 0)),    # w2: resident
            pl.BlockSpec((1, neurons), lambda i: (0, 0)),          # b2: resident
            pl.BlockSpec((neurons, out_pad), lambda i: (0, 0)),    # w3 (lane-padded): resident
            pl.BlockSpec((1, out_pad), lambda i: (0, 0)),          # b3 (lane-padded): resident
        ],
        out_specs=pl.BlockSpec((tb, out_pad), lambda i: (i, 0)),   # lane-dense output block
        compiler_params=pltpu.CompilerParams(
            dimension_semantics=("parallel",),   # shard batch grid across TCs (v7x megacore)
            vmem_limit_bytes=64 * 1024 * 1024,
        ),
    )(x_pad, w1, b1, w2, b2, w3p, b3p)

    return out[:B, :out_dim]


def init_params(key, in_dim, out_dim, neurons):
    """Deterministic PyTorch-style (Kaiming-uniform-ish) init of the 3 Linear layers."""
    ks = jax.random.split(key, 6)

    def linear(kw, kb, fan_in, fan_out):
        bound = 1.0 / jnp.sqrt(jnp.asarray(fan_in, jnp.float32))
        w = jax.random.uniform(kw, (fan_in, fan_out), jnp.float32, -bound, bound)
        b = jax.random.uniform(kb, (1, fan_out), jnp.float32, -bound, bound)
        return w, b

    w1, b1 = linear(ks[0], ks[1], in_dim, neurons)
    w2, b2 = linear(ks[2], ks[3], neurons, neurons)
    w3, b3 = linear(ks[4], ks[5], neurons, out_dim)
    return dict(w1=w1, b1=b1, w2=w2, b2=b2, w3=w3, b3=b3)


def relunn_reference(x, p):
    h1 = jnp.maximum(x @ p["w1"] + p["b1"], 0.0)
    h2 = jnp.maximum(h1 @ p["w2"] + p["b2"], 0.0)
    return 7.0 * jnp.tanh(h2 @ p["w3"] + p["b3"])


if __name__ == "__main__":
    in_dim, out_dim, neurons = 16, 4, 32

    key = jax.random.PRNGKey(0)
    kx1, kx2, kp = jax.random.split(key, 3)
    params = init_params(kp, in_dim, out_dim, neurons)

    # Small batch (single tile path).
    x_small = jax.random.normal(kx1, (8, in_dim), jnp.float32)
    out_small = jax.block_until_ready(relunn_forward(x_small, params))
    ref_small = relunn_reference(x_small, params)
    assert out_small.shape == (8, out_dim)
    assert jnp.allclose(out_small, ref_small, atol=1e-5, rtol=1e-5)

    # Larger, non-tile-multiple batch (multi-step grid + batch padding path).
    x_big = jax.random.normal(kx2, (2500, in_dim), jnp.float32)
    out_big = jax.block_until_ready(relunn_forward(x_big, params, tile_b=1024))
    ref_big = relunn_reference(x_big, params)
    assert out_big.shape == (2500, out_dim)
    assert jnp.allclose(out_big, ref_big, atol=1e-5, rtol=1e-5)

    print("KERNEL_OK")
</pallas_src>

<mosaic_0001>
module attributes {stable_mosaic.version = 11 : i64} {
  func.func @relunn_kernel(%arg0: i32, %arg1: memref<8x16xf32, #tpu.memory_space<vmem>>, %arg2: memref<16x32xf32, #tpu.memory_space<vmem>>, %arg3: memref<1x32xf32, #tpu.memory_space<vmem>>, %arg4: memref<32x32xf32, #tpu.memory_space<vmem>>, %arg5: memref<1x32xf32, #tpu.memory_space<vmem>>, %arg6: memref<32x128xf32, #tpu.memory_space<vmem>>, %arg7: memref<1x128xf32, #tpu.memory_space<vmem>>, %arg8: memref<8x128xf32, #tpu.memory_space<vmem>>) attributes {dimension_semantics = [#tpu.dimension_semantics<parallel>], iteration_bounds = array<i64: 1>, scalar_prefetch = 0 : i64, scratch_operands = 0 : i64, tpu.core_type = #tpu.core_type<tc>, window_params = [{transform_indices = @transform_0, window_bounds = array<i64: 8, 16>}, {pipeline_mode = #tpu.pipeline_mode<synchronous>, transform_indices = @transform_1, window_bounds = array<i64: 16, 32>}, {pipeline_mode = #tpu.pipeline_mode<synchronous>, transform_indices = @transform_2, window_bounds = array<i64: 1, 32>}, {pipeline_mode = #tpu.pipeline_mode<synchronous>, transform_indices = @transform_3, window_bounds = array<i64: 32, 32>}, {pipeline_mode = #tpu.pipeline_mode<synchronous>, transform_indices = @transform_4, window_bounds = array<i64: 1, 32>}, {pipeline_mode = #tpu.pipeline_mode<synchronous>, transform_indices = @transform_5, window_bounds = array<i64: 32, 128>}, {pipeline_mode = #tpu.pipeline_mode<synchronous>, transform_indices = @transform_6, window_bounds = array<i64: 1, 128>}, {transform_indices = @transform_7, window_bounds = array<i64: 8, 128>}]} {
    %c0 = arith.constant 0 : index
    %c0_0 = arith.constant 0 : index
    %0 = vector.load %arg1[%c0, %c0_0] : memref<8x16xf32, #tpu.memory_space<vmem>>, vector<8x16xf32>
    %c0_1 = arith.constant 0 : index
    %c0_2 = arith.constant 0 : index
    %1 = vector.load %arg2[%c0_1, %c0_2] : memref<16x32xf32, #tpu.memory_space<vmem>>, vector<16x32xf32>
    %cst = arith.constant dense<0.000000e+00> : vector<8x32xf32>
    %2 = tpu.matmul %0, %1, %cst {dimension_numbers = #tpu.dot_dimension_numbers<[1], [0], [0], [1], [0, 0, 1, 1], [], []>} : vector<8x16xf32>, vector<16x32xf32>, vector<8x32xf32> -> vector<8x32xf32>
    %c0_3 = arith.constant 0 : index
    %c0_4 = arith.constant 0 : index
    %3 = vector.load %arg3[%c0_3, %c0_4] : memref<1x32xf32, #tpu.memory_space<vmem>>, vector<1x32xf32>
    %4 = vector.broadcast %3 : vector<1x32xf32> to vector<8x32xf32>
    %5 = arith.addf %2, %4 : vector<8x32xf32>
    %cst_5 = arith.constant 0.000000e+00 : f32
    %6 = vector.broadcast %cst_5 : f32 to vector<8x32xf32>
    %7 = arith.maximumf %5, %6 : vector<8x32xf32>
    %c0_6 = arith.constant 0 : index
    %c0_7 = arith.constant 0 : index
    %8 = vector.load %arg4[%c0_6, %c0_7] : memref<32x32xf32, #tpu.memory_space<vmem>>, vector<32x32xf32>
    %cst_8 = arith.constant dense<0.000000e+00> : vector<8x32xf32>
    %9 = tpu.matmul %7, %8, %cst_8 {dimension_numbers = #tpu.dot_dimension_numbers<[1], [0], [0], [1], [0, 0, 1, 1], [], []>} : vector<8x32xf32>, vector<32x32xf32>, vector<8x32xf32> -> vector<8x32xf32>
    %c0_9 = arith.constant 0 : index
    %c0_10 = arith.constant 0 : index
    %10 = vector.load %arg5[%c0_9, %c0_10] : memref<1x32xf32, #tpu.memory_space<vmem>>, vector<1x32xf32>
    %11 = vector.broadcast %10 : vector<1x32xf32> to vector<8x32xf32>
    %12 = arith.addf %9, %11 : vector<8x32xf32>
    %cst_11 = arith.constant 0.000000e+00 : f32
    %13 = vector.broadcast %cst_11 : f32 to vector<8x32xf32>
    %14 = arith.maximumf %12, %13 : vector<8x32xf32>
    %c0_12 = arith.constant 0 : index
    %c0_13 = arith.constant 0 : index
    %15 = vector.load %arg6[%c0_12, %c0_13] : memref<32x128xf32, #tpu.memory_space<vmem>>, vector<32x128xf32>
    %cst_14 = arith.constant dense<0.000000e+00> : vector<8x128xf32>
    %16 = tpu.matmul %14, %15, %cst_14 {dimension_numbers = #tpu.dot_dimension_numbers<[1], [0], [0], [1], [0, 0, 1, 1], [], []>} : vector<8x32xf32>, vector<32x128xf32>, vector<8x128xf32> -> vector<8x128xf32>
    %c0_15 = arith.constant 0 : index
    %c0_16 = arith.constant 0 : index
    %17 = vector.load %arg7[%c0_15, %c0_16] : memref<1x128xf32, #tpu.memory_space<vmem>>, vector<1x128xf32>
    %18 = vector.broadcast %17 : vector<1x128xf32> to vector<8x128xf32>
    %19 = arith.addf %16, %18 : vector<8x128xf32>
    %20 = math.tanh %19 : vector<8x128xf32>
    %cst_17 = arith.constant 7.000000e+00 : f32
    %21 = vector.broadcast %cst_17 : f32 to vector<8x128xf32>
    %22 = arith.mulf %21, %20 : vector<8x128xf32>
    %c0_18 = arith.constant 0 : index
    %c0_19 = arith.constant 0 : index
    %23 = vector.load %arg8[%c0_18, %c0_19] : memref<8x128xf32, #tpu.memory_space<vmem>>, vector<8x128xf32>
    tpu.vector_store %arg8[%c0_18, %c0_19], %22 {strides = array<i32>} : memref<8x128xf32, #tpu.memory_space<vmem>>, vector<8x128xf32>,
    return
  }
  func.func @transform_0(%arg0: i32) -> (i32, i32) {
    %c0_i32 = arith.constant 0 : i32
    %c0_i32_0 = arith.constant 0 : i32
    return %arg0, %c0_i32 : i32, i32
  }
  func.func @transform_1(%arg0: i32) -> (i32, i32) {
    %c0_i32 = arith.constant 0 : i32
    %c0_i32_0 = arith.constant 0 : i32
    %c0_i32_1 = arith.constant 0 : i32
    return %c0_i32, %c0_i32_0 : i32, i32
  }
  func.func @transform_2(%arg0: i32) -> (i32, i32) {
    %c0_i32 = arith.constant 0 : i32
    %c0_i32_0 = arith.constant 0 : i32
    %c0_i32_1 = arith.constant 0 : i32
    return %c0_i32, %c0_i32_0 : i32, i32
  }
  func.func @transform_3(%arg0: i32) -> (i32, i32) {
    %c0_i32 = arith.constant 0 : i32
    %c0_i32_0 = arith.constant 0 : i32
    %c0_i32_1 = arith.constant 0 : i32
    return %c0_i32, %c0_i32_0 : i32, i32
  }
  func.func @transform_4(%arg0: i32) -> (i32, i32) {
    %c0_i32 = arith.constant 0 : i32
    %c0_i32_0 = arith.constant 0 : i32
    %c0_i32_1 = arith.constant 0 : i32
    return %c0_i32, %c0_i32_0 : i32, i32
  }
  func.func @transform_5(%arg0: i32) -> (i32, i32) {
    %c0_i32 = arith.constant 0 : i32
    %c0_i32_0 = arith.constant 0 : i32
    %c0_i32_1 = arith.constant 0 : i32
    return %c0_i32, %c0_i32_0 : i32, i32
  }
  func.func @transform_6(%arg0: i32) -> (i32, i32) {
    %c0_i32 = arith.constant 0 : i32
    %c0_i32_0 = arith.constant 0 : i32
    %c0_i32_1 = arith.constant 0 : i32
    return %c0_i32, %c0_i32_0 : i32, i32
  }
  func.func @transform_7(%arg0: i32) -> (i32, i32) {
    %c0_i32 = arith.constant 0 : i32
    %c0_i32_0 = arith.constant 0 : i32
    return %arg0, %c0_i32 : i32, i32
  }
}

</mosaic_0001>

<bundles_post_ra>
// kernel: tpu_custom_call.1
= control target key start
LH: loop header
LB: loop body
LE: loop exit
PB: predicated region body
PF: predicated region fallthrough
CT: control target
= control target key end

     0   :  { %12 = vsyncpa [#allocation3], 0  ;;  %s420_s0 = inlined_call_operand.hbm [shape: f32[8,16], index: 0, kind: input, shape index: {}]   ;;  %s421_s1 = inlined_call_operand.hbm [shape: f32[16,32], index: 1, kind: input, shape index: {}]   ;;  %s422_s2 = inlined_call_operand.vmem [shape: f32[1,32], index: 2, kind: input, shape index: {}]   ;;  %s423_s3 = inlined_call_operand.hbm [shape: f32[32,32], index: 3, kind: input, shape index: {}]   ;;  %s424_s4 = inlined_call_operand.vmem [shape: f32[1,32], index: 4, kind: input, shape index: {}]   ;;  %s425_s5 = inlined_call_operand.hbm [shape: f32[32,128], index: 5, kind: input, shape index: {}]   ;;  %s426_s6 = inlined_call_operand.vmem [shape: f32[1,128], index: 6, kind: input, shape index: {}]   ;;  %s427_s7 = inlined_call_operand.hbm [shape: f32[8,128], index: 7, kind: output, shape index: {}]  }
   0x1   :  { %13 = vsyncpa [#allocation6], 0 }
   0x2   :  { %14 = vsyncpa [#allocation9], 0  ;;  %s31_s26 = sshll.u32 %s421_s1, 4  ;;  %s32_s26 = int_to_ptr.hbm [resolvable:$true] %s31_s26 }
   0x3   :  { %15 = vsyncpa [#allocation4], 0  ;;  %s349_s27 = smov [#allocation5]   ;;  %s21_s8 = sshll.u32 %s420_s0, 4  ;;  %s22_s8 = int_to_ptr.hbm [resolvable:$true] %s21_s8 }
   0x4   :  { %s33_s28 = sshll.u32 %s349_s27, 4  ;;  %s350_s9 = smov 128   ;;  %s34_s28 = int_to_ptr.vmem [resolvable:$true] %s33_s28 }
   0x5   :  { %s351_s10 = smov 8   ;;  %s352_s11 = smov [#allocation2]  }
   0x6   :  { %39 = dma.hbm_to_vmem [thread:$0]  %s32_s26, 256, %s34_s28, [#allocation6], %s350_s9, %s350_s9, %s351_s10  }
   0x7   :  { %s23_s12 = sshll.u32 %s352_s11, 4  ;;  %s46_s15 = sshll.u32 %s423_s3, 4  ;;  %s24_s12 = int_to_ptr.vmem [resolvable:$true] %s23_s12  ;;  %s47_s15 = int_to_ptr.hbm [resolvable:$true] %s46_s15 }
   0x8   :  { %26 = dma.hbm_to_vmem [thread:$0]  %s22_s8, 128, %s24_s12, [#allocation3]  }
   0x9   :  { %s61_s17 = sshll.u32 %s425_s5, 4  ;;  %s353_s18 = smov [#allocation7]   ;;  %s62_s17 = int_to_ptr.hbm [resolvable:$true] %s61_s17 }
   0xa   :  { %s48_s19 = sshll.u32 %s353_s18, 4  ;;  %s354_s0 = smov [#allocation8]   ;;  %s49_s19 = int_to_ptr.vmem [resolvable:$true] %s48_s19 }
   0xb   :  { %54 = dma.hbm_to_vmem [thread:$0]  %s47_s15, 512, %s49_s19, [#allocation6], %s350_s9, %s350_s9, %s351_s10  }
   0xc   :  { %s63_s20 = sshll.u32 %s354_s0, 4  ;;  %s64_s20 = int_to_ptr.vmem [resolvable:$true] %s63_s20 }
   0xd   :  { %69 = dma.hbm_to_vmem [thread:$0]  %s62_s17, 512, %s64_s20, [#allocation9], %s350_s9, %s350_s9, %s351_s10  }
   0xe   :  { %341 = dma.done.wait [#allocation3], 128  }
   0xf   :  { %342 = vsyncadd [#allocation3], 4294967168 }
  0x10   :  { %343 = dma.done.wait [#allocation6], 768  }
  0x11   :  { %344 = vsyncadd [#allocation6], 4294966528 }
  0x12   :  { %345 = dma.done.wait [#allocation9], 512  }
  0x13   :  { %346 = vsyncadd [#allocation9], 4294966784  ;;  %v90_v0 = vld [vmem:[#allocation5 + $0x8] sm:$0xff]  ;;  %v89_v1 = vld [vmem:[#allocation5] sm:$0xff]  ;;  %vm95_vm0 = vcmask 130048   ;;  %vm128_vm1 = vcmask 261120  }
  0x14   :  { %113 = vmatpush.msra.mxu0 %v90_v0  ;;  %v88_v2 = vld [vmem:[#allocation2] sm:$0xff]  ;;  %v123_v3 = vld [vmem:[#allocation7 + $0x18] sm:$0xff]  ;;  %v122_v4 = vld [vmem:[#allocation7 + $0x10] sm:$0xff]  ;;  %s355_s24 = smov [#allocation10]   ;;  %s194_s28 = sshll.u32 %s427_s7, 4  ;;  %s195_s28 = int_to_ptr.hbm [resolvable:$true] %s194_s28 }
  0x15   :  { %144 = vmatpush.msra.mxu1 %v123_v3  ;;  %v121_v5 = vld [vmem:[#allocation7 + $0x8] sm:$0xff]  ;;  %v120_v6 = vld [vmem:[#allocation7] sm:$0xff]  ;;  %v156_v7 = vld [vmem:[#allocation8 + $0x18] sm:$0xff]  ;;  %s192_s25 = sshll.u32 %s355_s24, 4  ;;  %s193_s25 = int_to_ptr.vmem [resolvable:$true] %s192_s25 }
  0x16   :  { %114 = vmatpush.msra.mxu0 %v89_v1  ;;  %176 = vmatpush.msra.mxu2 %v156_v7  ;;  %v216_v8 = vld [vmem:[%s422_s2] ss:$0 sm:$0xff]  ;;  %v155_v12 = vld [vmem:[#allocation8 + $0x10] sm:$0xff]  ;;  %v153_v14 = vld [vmem:[#allocation8] sm:$0xff] }
  0x17   :  { %206 = vmatmul.msk.f32.vlgmr.msra.gmra.mxu0 %vm95_vm0, %v88_v2  ;;  %145 = vmatpush.msra.mxu1 %v122_v4  ;;  %v154_v13 = vld [vmem:[#allocation8 + $0x8] sm:$0xff] }
  0x18   :  { %177 = vmatpush.msra.mxu2 %v155_v12  ;;  %v217_v15 = vld [vmem:[%s424_s4] ss:$0 sm:$0xff] }
  0x19   :  { %146 = vmatpush.msra.mxu1 %v121_v5  ;;  %v218_v19 = vld [vmem:[%s426_s6] ss:$0 sm:$0xff] }
  0x1a   :  { %178 = vmatpush.msra.mxu2 %v154_v13 }
  0x1b   :  { %147 = vmatpush.msra.mxu1 %v120_v6 }
  0x1c   :  { %179 = vmatpush.msra.mxu2 %v153_v14 }
  0x94   :  { %v116_v9 = vpop.f32.mrf.mxu0 }
  0x95   :  { %v117_v10 = vadd.f32 %v216_v8, %v116_v9 }
  0x97   :  { %v119_v11 = vmax.f32 %v117_v10, 0.0 }
  0x99   :  { %207 = vmatmul.msk.f32.vlgmr.msra.gmra.mxu1 %vm128_vm1, %v119_v11 }
 0x116   :  { %v149_v16 = vpop.f32.mrf.mxu1 }
 0x117   :  { %v150_v17 = vadd.f32 %v217_v15, %v149_v16 }
 0x119   :  { %v152_v18 = vmax.f32 %v150_v17, 0.0 }
 0x11b   :  { %208 = vmatmul.msk.f32.vlgmr.msra.gmra.mxu2 %vm128_vm1, %v152_v18 }
 0x19e   :  { %v181_v20 = vpop.f32.mrf.mxu2 }
 0x19f   :  { %v182_v21 = vadd.f32 %v218_v19, %v181_v20 }
 0x1a1   :  { %219 = vtanh.f32 %v182_v21 }
 0x1a7   :  { %v220_v22 = vpop.eup %219 }
 0x1a8   :  { %v185_v23 = vmul.f32 7.0, %v220_v22 }
 0x1aa   :  { %186 = vst [vmem:[#allocation10] sm:$0xff] %v185_v23 }
 0x1ab   :  { %197 = dma.vmem_to_hbm [thread:$0]  %s193_s25, 128, %s195_s28, [#allocation4]  }
 0x1ac   :  { %347 = dma.done.wait [#allocation4], 128  }
 0x1ad   :  { %348 = vsyncadd [#allocation4], 4294967168 }
 0x1ae   :  { %202 = vsyncpa [#allocation3], 1 }
 0x1af   :  { %203 = vsyncpa [#allocation6], 1 }
 0x1b0   :  { %204 = vsyncpa [#allocation9], 1 }
 0x1b1   :  { %205 = vsyncpa [#allocation4], 1 }

</bundles_post_ra>
